<compile_context>
chip_gen: v7x
topology: tpu7x:2x2x1
jax: 0.10.0
libtpu: 0.0.40
codegen_flags: <defaults>
</compile_context>

<pallas_src>
import functools

import jax
import jax.numpy as jnp
from jax.experimental import pallas as pl
from jax.experimental.pallas import tpu as pltpu


def _adain_kernel(x_ref, wb_ref, o_ref, *, eps, inv_n, row_block):
    # x_ref : (row_block, HW)   one block of instances, full spatial extent
    # wb_ref: (BC_wb, 2)        resident packed [weight, bias] (fp32)
    i = pl.program_id(0)
    row0 = pl.multiple_of(i * row_block, row_block)

    x = x_ref[...].astype(jnp.float32)
    wb = wb_ref[pl.ds(row0, row_block), :]          # (row_block, 2)
    w = wb[:, 0:1]
    b = wb[:, 1:2]

    inv_nf = jnp.float32(inv_n)
    mean = jnp.sum(x, axis=-1, keepdims=True) * inv_nf
    xm = x - mean
    # batch_norm(training=True) uses the biased variance; two-pass form (reuse
    # xm) avoids fp32 cancellation of the E[x^2] - mean^2 form.
    var = jnp.sum(xm * xm, axis=-1, keepdims=True) * inv_nf
    inv_std = jax.lax.rsqrt(var + jnp.float32(eps))
    o_ref[...] = (xm * (inv_std * w) + b).astype(o_ref.dtype)


def _round_up(v, m):
    return ((v + m - 1) // m) * m


def adaptive_instance_norm_2d(
    x, weight, bias, *, eps=1e-5, row_block=None, target_block_bytes=4 << 20
):
    """x: (B, C, H, W); weight, bias: (B*C,). Returns (B, C, H, W)."""
    B, C, H, W = x.shape
    BC, HW = B * C, H * W
    assert weight.shape == (BC,) and bias.shape == (BC,)

    itemsize = jnp.dtype(x.dtype).itemsize
    sub = max(8, 32 // itemsize)          # sublane packing multiple (8/16/32)
    HW_phys = _round_up(HW, 128)          # physical VMEM width (lane padding)

    # TODO(synk): add a spatially-chunked two-pass path (grid over HW marked
    # "arbitrary", accumulate sum/sumsq in VMEM scratch) for images whose
    # minimal 8-row block no longer fits v7x's 64 MiB VMEM.
    if row_block is None:
        rb = max(sub, (target_block_bytes // max(1, HW_phys * itemsize)) // sub * sub)
        bc_pad = _round_up(BC, sub)
        rb = min(rb, bc_pad)
        # Keep >= 2 grid steps when possible so both v7x TensorCores get work.
        if bc_pad >= 2 * sub and rb > bc_pad // 2:
            rb = max(sub, (bc_pad // 2) // sub * sub)
        row_block = rb
    row_block = max(sub, (row_block // sub) * sub)

    num_blocks = pl.cdiv(BC, row_block)
    grid = (num_blocks,)
    BC_wb = num_blocks * row_block

    # Free metadata reshape; no host-side padding / copy of x.
    x2d = x.reshape(BC, HW)

    wb = jnp.stack(
        [weight.astype(jnp.float32), bias.astype(jnp.float32)], axis=-1
    )  # (BC, 2)
    if BC_wb != BC:
        wb = jnp.pad(wb, ((0, BC_wb - BC), (0, 0)))   # tiny; only wb is padded

    # Explicit VMEM budget: double-buffered x block + double-buffered output
    # block + resident weight/bias slab (physically padded to 128 lanes), plus
    # headroom.  ~20 MiB at the 4 MiB block target.
    block_bytes = row_block * HW_phys * itemsize
    wb_bytes = _round_up(BC_wb, 8) * 128 * 4
    vmem_limit = 4 * block_bytes + wb_bytes + (4 << 20)
    vmem_limit = int(min(max(vmem_limit, 16 << 20), 48 << 20))

    out2d = pl.pallas_call(
        functools.partial(
            _adain_kernel,
            eps=float(eps),
            inv_n=1.0 / HW,
            row_block=row_block,
        ),
        out_shape=jax.ShapeDtypeStruct((BC, HW), x.dtype),
        grid_spec=pltpu.PrefetchScalarGridSpec(
            num_scalar_prefetch=0,
            grid=grid,
            in_specs=[
                pl.BlockSpec((row_block, HW), lambda i: (i, 0)),
                pl.BlockSpec((BC_wb, 2), lambda i: (0, 0)),   # fetched once
            ],
            out_specs=pl.BlockSpec((row_block, HW), lambda i: (i, 0)),
        ),
        compiler_params=pltpu.CompilerParams(
            dimension_semantics=("parallel",),
            vmem_limit_bytes=vmem_limit,
        ),
    )(x2d, wb)

    return out2d.reshape(B, C, H, W)


def adain_reference(x, weight, bias, eps=1e-5):
    B, C, H, W = x.shape
    xf = x.reshape(B * C, H * W).astype(jnp.float32)
    mean = jnp.mean(xf, axis=-1, keepdims=True)
    var = jnp.mean(jnp.square(xf - mean), axis=-1, keepdims=True)
    out = (xf - mean) / jnp.sqrt(var + eps)
    out = out * weight[:, None].astype(jnp.float32) + bias[:, None].astype(jnp.float32)
    return out.reshape(B, C, H, W).astype(x.dtype)


def _run_case(key, B, C, H, W, dtype=jnp.float32, eps=1e-5, atol=1e-4, rtol=1e-4):
    kx, kw, kb = jax.random.split(key, 3)
    x = jax.random.normal(kx, (B, C, H, W), dtype=dtype)
    # AdaIN weight/bias are assigned externally (length B*C); synthesize them
    # deterministically here instead of loading a checkpoint.
    weight = 1.0 + 0.1 * jax.random.normal(kw, (B * C,), dtype=jnp.float32)
    bias = 0.1 * jax.random.normal(kb, (B * C,), dtype=jnp.float32)

    out = adaptive_instance_norm_2d(x, weight, bias, eps=eps)
    out = jax.block_until_ready(out)
    ref = adain_reference(x, weight, bias, eps=eps)
    assert out.shape == (B, C, H, W) and out.dtype == x.dtype
    assert jnp.allclose(
        out.astype(jnp.float32), ref.astype(jnp.float32), atol=atol, rtol=rtol
    ), f"mismatch vs reference for shape {(B, C, H, W)} dtype {dtype}"


if __name__ == "__main__":
    key = jax.random.PRNGKey(0)
    k1, k2, k3, k4 = jax.random.split(key, 4)

    # Aligned case (HW multiple of 128, BC multiple of sublane width).
    _run_case(k1, B=2, C=4, H=16, W=16)
    # Ragged case: HW not a multiple of 128 and BC not a multiple of 8 ->
    # exercises the unpadded lane path and the partial last row block.
    _run_case(k2, B=2, C=3, H=10, W=10)
    # Multi-block grid case: exercises the resident weight/bias slab slicing
    # and the >=2 grid-step megacore split.
    _run_case(k3, B=4, C=64, H=32, W=32)
    # bf16 path: exercises the 16-row sublane packing and dtype casts.
    _run_case(k4, B=2, C=16, H=16, W=16, dtype=jnp.bfloat16, atol=6e-2, rtol=6e-2)

    print("KERNEL_OK")
</pallas_src>

<mosaic_0001>
module attributes {stable_mosaic.version = 11 : i64} {
  func.func @_adain_kernel(%arg0: i32, %arg1: memref<8x256xf32, #tpu.memory_space<vmem>>, %arg2: memref<8x2xf32, #tpu.memory_space<vmem>>, %arg3: memref<8x256xf32, #tpu.memory_space<vmem>>) attributes {dimension_semantics = [#tpu.dimension_semantics<parallel>], iteration_bounds = array<i64: 1>, scalar_prefetch = 0 : i64, scratch_operands = 0 : i64, tpu.core_type = #tpu.core_type<tc>, window_params = [{transform_indices = @transform_0, window_bounds = array<i64: 8, 256>}, {pipeline_mode = #tpu.pipeline_mode<synchronous>, transform_indices = @transform_1, window_bounds = array<i64: 8, 2>}, {transform_indices = @transform_2, window_bounds = array<i64: 8, 256>}]} {
    %c8_i32 = arith.constant 8 : i32
    %0 = arith.muli %arg0, %c8_i32 : i32
    %1 = tpu.assume_multiple %0, 8 : i32
    %c0 = arith.constant 0 : index
    %c0_0 = arith.constant 0 : index
    %2 = vector.load %arg1[%c0, %c0_0] : memref<8x256xf32, #tpu.memory_space<vmem>>, vector<8x256xf32>
    %3 = arith.index_cast %1 : i32 to index
    %c0_1 = arith.constant 0 : index
    %4 = vector.load %arg2[%3, %c0_1] : memref<8x2xf32, #tpu.memory_space<vmem>>, vector<8x2xf32>
    %5 = vector.extract_strided_slice %4 {offsets = [0, 0], sizes = [8, 1], strides = [1, 1]} : vector<8x2xf32> to vector<8x1xf32>
    %6 = vector.extract_strided_slice %4 {offsets = [0, 1], sizes = [8, 1], strides = [1, 1]} : vector<8x2xf32> to vector<8x1xf32>
    %cst = arith.constant dense<0.000000e+00> : vector<8xf32>
    %7 = vector.multi_reduction <add>, %2, %cst [1] : vector<8x256xf32> to vector<8xf32>
    %8 = vector.shape_cast %7 : vector<8xf32> to vector<8x1xf32>
    %cst_2 = arith.constant 3.906250e-03 : f32
    %9 = vector.broadcast %cst_2 : f32 to vector<8x1xf32>
    %10 = arith.mulf %8, %9 : vector<8x1xf32>
    %11 = vector.broadcast %10 : vector<8x1xf32> to vector<8x256xf32>
    %12 = arith.subf %2, %11 : vector<8x256xf32>
    %13 = arith.mulf %12, %12 : vector<8x256xf32>
    %cst_3 = arith.constant dense<0.000000e+00> : vector<8xf32>
    %14 = vector.multi_reduction <add>, %13, %cst_3 [1] : vector<8x256xf32> to vector<8xf32>
    %15 = vector.shape_cast %14 : vector<8xf32> to vector<8x1xf32>
    %cst_4 = arith.constant 3.906250e-03 : f32
    %16 = vector.broadcast %cst_4 : f32 to vector<8x1xf32>
    %17 = arith.mulf %15, %16 : vector<8x1xf32>
    %cst_5 = arith.constant 9.99999974E-6 : f32
    %18 = vector.broadcast %cst_5 : f32 to vector<8x1xf32>
    %19 = arith.addf %17, %18 : vector<8x1xf32>
    %20 = math.rsqrt %19 : vector<8x1xf32>
    %21 = arith.mulf %20, %5 : vector<8x1xf32>
    %22 = vector.broadcast %21 : vector<8x1xf32> to vector<8x256xf32>
    %23 = arith.mulf %12, %22 : vector<8x256xf32>
    %24 = vector.broadcast %6 : vector<8x1xf32> to vector<8x256xf32>
    %25 = arith.addf %23, %24 : vector<8x256xf32>
    %c0_6 = arith.constant 0 : index
    %c0_7 = arith.constant 0 : index
    %26 = vector.load %arg3[%c0_6, %c0_7] : memref<8x256xf32, #tpu.memory_space<vmem>>, vector<8x256xf32>
    tpu.vector_store %arg3[%c0_6, %c0_7], %25 {strides = array<i32>} : memref<8x256xf32, #tpu.memory_space<vmem>>, vector<8x256xf32>,
    return
  }
  func.func @transform_0(%arg0: i32) -> (i32, i32) {
    %c0_i32 = arith.constant 0 : i32
    %c0_i32_0 = arith.constant 0 : i32
    return %arg0, %c0_i32 : i32, i32
  }
  func.func @transform_1(%arg0: i32) -> (i32, i32) {
    %c0_i32 = arith.constant 0 : i32
    %c0_i32_0 = arith.constant 0 : i32
    %c0_i32_1 = arith.constant 0 : i32
    return %c0_i32, %c0_i32_0 : i32, i32
  }
  func.func @transform_2(%arg0: i32) -> (i32, i32) {
    %c0_i32 = arith.constant 0 : i32
    %c0_i32_0 = arith.constant 0 : i32
    return %arg0, %c0_i32 : i32, i32
  }
}

</mosaic_0001>

<bundles_post_ra>
// kernel: tpu_custom_call.1
= control target key start
LH: loop header
LB: loop body
LE: loop exit
PB: predicated region body
PF: predicated region fallthrough
CT: control target
= control target key end

     0   :  { %7 = vsyncpa [#allocation3], 0  ;;  %s178_s0 = inlined_call_operand.hbm [shape: f32[8,256], index: 0, kind: input, shape index: {}]   ;;  %s179_s1 = inlined_call_operand.vmem [shape: f32[8,2], index: 1, kind: input, shape index: {}]   ;;  %s180_s2 = inlined_call_operand.hbm [shape: f32[8,256], index: 2, kind: output, shape index: {}]  }
   0x1   :  { %8 = vsyncpa [#allocation4], 0  ;;  %s132_s9 = smov [#allocation2]   ;;  %s84_s13 = scalar_lea.hbm %s178_s0, 256 }
   0x2   :  { %s15_s10 = sshll.u32 %s132_s9, 4  ;;  %p85_p0 = scmp.ne.s32.totalorder %s178_s0, %s84_s13  ;;  %s16_s10 = int_to_ptr.vmem [resolvable:$true] %s15_s10 }
   0x3   :  { %p88_p1 = scmp.lt.u32.totalorder %s84_s13, %s178_s0 }
   0x5   :  { %p90_p2 = pnand %p88_p1, %p85_p0 }
   0x7   :  { %93 = shalt.err (!%p90_p2)
}
   0x8   :  { %s94_s18 = scalar_lea.vmem %s16_s10, 256  ;;  %p99_p4 = scmp.lt.s32.totalorder %s16_s10, %s16_s10 }
   0x9   :  { %p95_p3 = scmp.ne.s32.totalorder %s16_s10, %s94_s18  ;;  %p100_p5 = scmp.lt.s32.totalorder %s94_s18, %s94_s18 }
   0xb   :  { %p101_p6 = por %p100_p5, %p99_p4 }
   0xd   :  { %p102_p7 = pnand %p101_p6, %p95_p3 }
   0xf   :  { %105 = shalt.err (!%p102_p7)
}
  0x10   :  { %18 = dma.hbm_to_vmem [thread:$0]  %s178_s0, 256, %s16_s10, [#allocation3]  }
  0x11   :  { %128 = dma.done.wait [#allocation3], 256  }
  0x12   :  { %129 = vsyncadd [#allocation3], 4294967040  ;;  %v25_v0 = vld [vmem:[#allocation2] sm:$0xff]  ;;  %v26_v1 = vld [vmem:[#allocation2 + $0x8] sm:$0xff]  ;;  %v133_v10 = vmov 0   ;;  %v134_v11 = vmov 1  }
  0x13   :  { %v29_v2 = vadd.f32 %v26_v1, %v25_v0  ;;  %79 = vset.pattern.permute.xlu1 %v133_v10  ;;  %81 = vset.pattern.permute.xlu0 %v134_v11  ;;  %v28_v15 = vld [vmem:[%s179_s1] sm:$0xff]  ;;  %s135_s22 = smov [#allocation5]  }
  0x14   :  { %s66_s23 = sshll.u32 %s135_s22, 4  ;;  %s67_s23 = int_to_ptr.vmem [resolvable:$true] %s66_s23 }
  0x15   :  { %30 = vadd.xlane.f32.xlu0 %v29_v2  ;;  %s106_s24 = scalar_lea.vmem %s67_s23, 256  ;;  %p111_p9 = scmp.lt.s32.totalorder %s67_s23, %s67_s23 }
  0x16   :  { %p107_p8 = scmp.ne.s32.totalorder %s67_s23, %s106_s24  ;;  %p112_p10 = scmp.lt.s32.totalorder %s106_s24, %s106_s24 }
  0x18   :  { %p113_p11 = por %p112_p10, %p111_p9 }
  0x1a   :  { %p114_p12 = pnand %p113_p11, %p107_p8 }
  0xa2   :  { %v31_v3 = vpop.xlane.xlu0 %30 }
  0xa3   :  { %v32_v4 = vmul.f32 0.00390625, %v31_v3 }
  0xa5   :  { %v33_v5 = vsub.f32 %v25_v0, %v32_v4  ;;  %v34_v6 = vsub.f32 %v26_v1, %v32_v4 }
  0xa7   :  { %v35_v7 = vmul.f32 %v33_v5, %v33_v5  ;;  %v36_v8 = vmul.f32 %v34_v6, %v34_v6 }
  0xa9   :  { %v37_v9 = vadd.f32 %v36_v8, %v35_v7 }
  0xab   :  { %38 = vadd.xlane.f32.xlu0 %v37_v9 }
 0x138   :  { %v39_v12 = vpop.xlane.xlu0 %38 }
 0x139   :  { %v40_v13 = vmul.f32 0.00390625, %v39_v12 }
 0x13b   :  { %v41_v14 = vadd.f32 1e-05, %v40_v13 }
 0x13d   :  { %82 = vrsqrt.f32 %v41_v14 }
 0x147   :  { %v83_v16 = vpop.eup %82 }
 0x148   :  { %v43_v17 = vmul.f32 %v83_v16, %v28_v15 }
 0x14a   :  { %46 = vperm.xlu1 %79, %v43_v17  }
 0x14e   :  { %80 = vset.pattern.permute.xlu1 %v134_v11 }
 0x14f   :  { %53 = vperm.xlu1 %80, %v28_v15  }
 0x1c9   :  { %v47_v18 = vpop.permute.xlu1 %46 }
 0x1ca   :  { %v49_v19 = vmul.f32 %v47_v18, %v33_v5  ;;  %v50_v20 = vmul.f32 %v47_v18, %v34_v6 }
 0x1ce   :  { %v54_v21 = vpop.permute.xlu1 %53 }
 0x1cf   :  { %v56_v22 = vadd.f32 %v54_v21, %v49_v19  ;;  %v57_v23 = vadd.f32 %v54_v21, %v50_v20 }
 0x1d1   :  { %58 = vst [vmem:[#allocation5] sm:$0xff] %v56_v22  ;;  %59 = vst [vmem:[#allocation5 + $0x8] sm:$0xff] %v57_v23 }
 0x1d2   :  { %117 = shalt.err (!%p114_p12)
}
 0x1d3   :  { %s118_s26 = scalar_lea.hbm %s180_s2, 256 }
 0x1d4   :  { %p119_p13 = scmp.ne.s32.totalorder %s180_s2, %s118_s26  ;;  %p122_p0 = scmp.lt.u32.totalorder %s118_s26, %s180_s2 }
 0x1d6   :  { %p124_p1 = pnand %p122_p0, %p119_p13 }
 0x1d8   :  { %127 = shalt.err (!%p124_p1)
}
 0x1d9   :  { %69 = dma.vmem_to_hbm [thread:$0]  %s67_s23, 256, %s180_s2, [#allocation4]  }
 0x1da   :  { %130 = dma.done.wait [#allocation4], 256  }
 0x1db   :  { %131 = vsyncadd [#allocation4], 4294967040 }
 0x1dc   :  { %73 = vsyncpa [#allocation3], 1 }
 0x1dd   :  { %74 = vsyncpa [#allocation4], 1 }

</bundles_post_ra>
